<compile_context>
chip_gen: v7x
topology: tpu7x:2x2x1
jax: 0.10.0
libtpu: 0.0.40
codegen_flags: <defaults>
</compile_context>

<pallas_src>
import jax
import jax.numpy as jnp
import numpy as np
from jax.experimental import pallas as pl
from jax.experimental.pallas import tpu as pltpu


def lstm_lm_kernel(x_ref, wih_ref, whh_ref, b_ref, wout_ref, bout_ref, out_ref):
    """Full LSTM recurrence + final vocab projection, entirely in VMEM.

    x_ref   : (T*Bp, E) f32   time-major embedded inputs, batch padded to Bp
    wih_ref : (E, 4H)   f32   input->gates weight (transposed, gate order i,f,g,o)
    whh_ref : (4H, 4H)  f32   hidden->gates weight; rows [H,4H) are zero
    b_ref   : (1, 4H)   f32   bias_ih + bias_hh
    wout_ref: (4H, Vp)  f32   output projection; rows [H,4H) zero, cols [V,Vp) zero
    bout_ref: (1, Vp)   f32   output projection bias (zero-padded)
    out_ref : (Bp, Vp)  f32   logits of the last timestep (lane-dense store)
    """
    TB, E = x_ref.shape
    Bp, Vp = out_ref.shape
    G = whh_ref.shape[1]          # 4H (=128 for H=32 -> one full vreg of lanes)
    H = G // 4
    T = TB // Bp

    # (1) Hoisted input projection: one matmul + one bias broadcast for all steps.
    xw = (
        jnp.dot(x_ref[...], wih_ref[...], preferred_element_type=jnp.float32)
        + b_ref[...]
    )  # (T*Bp, 4H)

    # (2) Recurrent weight loaded once, reused across the whole unrolled chain.
    w_hh = whh_ref[...]           # (4H, 4H); zero rows ignore garbage state lanes.

    # Wide state: only lanes [0, H) are meaningful; the rest carry bounded garbage
    # that is annihilated by the zero rows of w_hh / w_out.
    h = jnp.zeros((Bp, G), jnp.float32)
    c = jnp.zeros((Bp, G), jnp.float32)

    # (3) Fully unrolled recurrence (T is static) -> static, sublane-aligned slices
    #     and full cross-step scheduler visibility.
    for t in range(T):
        gates = (
            jnp.dot(h, w_hh, preferred_element_type=jnp.float32)
            + xw[t * Bp:(t + 1) * Bp, :]
        )  # (Bp, 4H), gate order i | f | g | o along lanes
        sig = jax.nn.sigmoid(gates)   # one full-vreg EUP op covers i, f, o
        th = jnp.tanh(gates)          # one full-vreg EUP op covers g
        # Align f / g / o gate blocks onto lanes [0, H) via XLU lane rotations
        # (i is already at lanes [0, H)).  pltpu.roll == jnp.roll semantics.
        f_al = pltpu.roll(sig, G - H, axis=1)        # lanes [H,2H)  -> [0,H)
        g_al = pltpu.roll(th, G - 2 * H, axis=1)     # lanes [2H,3H) -> [0,H)
        o_al = pltpu.roll(sig, G - 3 * H, axis=1)    # lanes [3H,4H) -> [0,H)
        c = f_al * c + sig * g_al                    # valid in lanes [0, H)
        h = o_al * jnp.tanh(c)                       # garbage lanes stay bounded

    # Final projection to (padded) vocab: lane-dense (Bp, Vp) store.
    out_ref[...] = (
        jnp.dot(h, wout_ref[...], preferred_element_type=jnp.float32)
        + bout_ref[...]
    )


def init_params(key, vocab_size, em_size, hidden_size):
    ks = jax.random.split(key, 7)
    bound = 1.0 / np.sqrt(hidden_size)
    emb = jax.random.normal(ks[0], (vocab_size, em_size), jnp.float32)
    # PyTorch stores W_ih as (4H, E) / W_hh as (4H, H); keep transposed for x @ W.
    w_ih = jax.random.uniform(ks[1], (em_size, 4 * hidden_size), jnp.float32, -bound, bound)
    w_hh = jax.random.uniform(ks[2], (hidden_size, 4 * hidden_size), jnp.float32, -bound, bound)
    b_ih = jax.random.uniform(ks[3], (4 * hidden_size,), jnp.float32, -bound, bound)
    b_hh = jax.random.uniform(ks[4], (4 * hidden_size,), jnp.float32, -bound, bound)
    w_out = jax.random.uniform(ks[5], (hidden_size, vocab_size), jnp.float32, -bound, bound)
    b_out = jax.random.uniform(ks[6], (vocab_size,), jnp.float32, -bound, bound)
    return {
        "embedding": emb,
        "w_ih": w_ih,
        "w_hh": w_hh,
        "b": (b_ih + b_hh).reshape(1, -1),
        "w_out": w_out,
        "b_out": b_out.reshape(1, -1),
    }


def lstm_lm_forward(X, Y, params):
    """Equivalent of LSTM_LM.forward(X, Y)."""
    B, T = X.shape
    emb = params["embedding"]
    V, E = emb.shape
    H = params["w_hh"].shape[0]
    G = 4 * H

    Bp = ((B + 7) // 8) * 8            # pad batch to full sublane group
    Vp = ((V + 127) // 128) * 128      # pad vocab to full lane group

    # Embedding gather directly in time-major order (no separate transpose op);
    # zero-pad the batch axis, then flatten to (T*Bp, E) for the hoisted matmul.
    emb_t = emb[X.T]                                        # (T, B, E)
    emb_t = jnp.pad(emb_t, ((0, 0), (0, Bp - B), (0, 0)))   # (T, Bp, E)
    x_flat = emb_t.reshape(T * Bp, E)

    # Zero-pad recurrent / output weights so the kernel's wide (Bp, 4H) state
    # needs no narrow lane slices: garbage lanes multiply zero weight rows.
    w_hh_pad = jnp.zeros((G, G), jnp.float32).at[:H, :].set(params["w_hh"])
    w_out_pad = jnp.zeros((G, Vp), jnp.float32).at[:H, :V].set(params["w_out"])
    b_out_pad = jnp.zeros((1, Vp), jnp.float32).at[:, :V].set(params["b_out"])

    vmem = pl.BlockSpec(memory_space=pltpu.MemorySpace.VMEM)
    out_pad = pl.pallas_call(
        lstm_lm_kernel,
        out_shape=jax.ShapeDtypeStruct((Bp, Vp), jnp.float32),
        in_specs=[vmem] * 6,
        out_specs=vmem,
    )(x_flat, params["w_ih"], w_hh_pad, params["b"], w_out_pad, b_out_pad)

    vocab_output = out_pad[:B, :V].reshape(-1, V)
    return vocab_output, Y.reshape(-1)


def lstm_lm_forward_ref(X, Y, params):
    """Pure-JAX reference for correctness checking."""
    emb = params["embedding"][X]
    B, T, E = emb.shape
    H = params["w_hh"].shape[0]
    V = params["embedding"].shape[0]
    h = jnp.zeros((B, H), jnp.float32)
    c = jnp.zeros((B, H), jnp.float32)
    for t in range(T):
        gates = emb[:, t, :] @ params["w_ih"] + h @ params["w_hh"] + params["b"]
        i_g = jax.nn.sigmoid(gates[:, 0:H])
        f_g = jax.nn.sigmoid(gates[:, H:2 * H])
        g_g = jnp.tanh(gates[:, 2 * H:3 * H])
        o_g = jax.nn.sigmoid(gates[:, 3 * H:4 * H])
        c = f_g * c + i_g * g_g
        h = o_g * jnp.tanh(c)
    out = h @ params["w_out"] + params["b_out"]
    return out.reshape(-1, V), Y.reshape(-1)


if __name__ == "__main__":
    VOCAB, EM, HID = 64, 32, 32
    B, T = 2, 8

    key = jax.random.PRNGKey(0)
    k_params, k_x, k_y = jax.random.split(key, 3)
    params = init_params(k_params, VOCAB, EM, HID)

    X = jax.random.randint(k_x, (B, T), 0, VOCAB, dtype=jnp.int32)
    Y = jax.random.randint(k_y, (B,), 0, VOCAB, dtype=jnp.int32)

    logits, y_flat = lstm_lm_forward(X, Y, params)
    logits = jax.block_until_ready(logits)
    y_flat = jax.block_until_ready(y_flat)

    ref_logits, ref_y = lstm_lm_forward_ref(X, Y, params)
    np.testing.assert_allclose(np.asarray(logits), np.asarray(ref_logits),
                               rtol=2e-3, atol=2e-3)
    np.testing.assert_array_equal(np.asarray(y_flat), np.asarray(ref_y))

    print("KERNEL_OK")
</pallas_src>

<mosaic_0001>
module attributes {stable_mosaic.version = 11 : i64} {
  func.func @lstm_lm_kernel(%arg0: memref<64x32xf32, #tpu.memory_space<vmem>>, %arg1: memref<32x128xf32, #tpu.memory_space<vmem>>, %arg2: memref<128x128xf32, #tpu.memory_space<vmem>>, %arg3: memref<1x128xf32, #tpu.memory_space<vmem>>, %arg4: memref<128x128xf32, #tpu.memory_space<vmem>>, %arg5: memref<1x128xf32, #tpu.memory_space<vmem>>, %arg6: memref<8x128xf32, #tpu.memory_space<vmem>>) attributes {dimension_semantics = [], scalar_prefetch = 0 : i64, scratch_operands = 0 : i64, tpu.core_type = #tpu.core_type<tc>} {
    %c0 = arith.constant 0 : index
    %c0_0 = arith.constant 0 : index
    %0 = vector.load %arg0[%c0, %c0_0] : memref<64x32xf32, #tpu.memory_space<vmem>>, vector<64x32xf32>
    %c0_1 = arith.constant 0 : index
    %c0_2 = arith.constant 0 : index
    %1 = vector.load %arg1[%c0_1, %c0_2] : memref<32x128xf32, #tpu.memory_space<vmem>>, vector<32x128xf32>
    %cst = arith.constant dense<0.000000e+00> : vector<64x128xf32>
    %2 = tpu.matmul %0, %1, %cst {dimension_numbers = #tpu.dot_dimension_numbers<[1], [0], [0], [1], [0, 0, 1, 1], [], []>} : vector<64x32xf32>, vector<32x128xf32>, vector<64x128xf32> -> vector<64x128xf32>
    %c0_3 = arith.constant 0 : index
    %c0_4 = arith.constant 0 : index
    %3 = vector.load %arg3[%c0_3, %c0_4] : memref<1x128xf32, #tpu.memory_space<vmem>>, vector<1x128xf32>
    %4 = vector.broadcast %3 : vector<1x128xf32> to vector<64x128xf32>
    %5 = arith.addf %2, %4 : vector<64x128xf32>
    %c0_5 = arith.constant 0 : index
    %c0_6 = arith.constant 0 : index
    %6 = vector.load %arg2[%c0_5, %c0_6] : memref<128x128xf32, #tpu.memory_space<vmem>>, vector<128x128xf32>
    %cst_7 = arith.constant 0.000000e+00 : f32
    %7 = vector.broadcast %cst_7 : f32 to vector<8x128xf32>
    %cst_8 = arith.constant 0.000000e+00 : f32
    %8 = vector.broadcast %cst_8 : f32 to vector<8x128xf32>
    %cst_9 = arith.constant dense<0.000000e+00> : vector<8x128xf32>
    %9 = tpu.matmul %7, %6, %cst_9 {dimension_numbers = #tpu.dot_dimension_numbers<[1], [0], [0], [1], [0, 0, 1, 1], [], []>} : vector<8x128xf32>, vector<128x128xf32>, vector<8x128xf32> -> vector<8x128xf32>
    %10 = vector.extract_strided_slice %5 {offsets = [0, 0], sizes = [8, 128], strides = [1, 1]} : vector<64x128xf32> to vector<8x128xf32>
    %11 = arith.addf %9, %10 : vector<8x128xf32>
    %12 = arith.negf %11 : vector<8x128xf32>
    %13 = math.exp %12 : vector<8x128xf32>
    %cst_10 = arith.constant 1.000000e+00 : f32
    %14 = vector.broadcast %cst_10 : f32 to vector<8x128xf32>
    %15 = arith.addf %14, %13 : vector<8x128xf32>
    %16 = arith.divf %14, %15 : vector<8x128xf32>
    %17 = math.tanh %11 : vector<8x128xf32>
    %c96_i32 = arith.constant 96 : i32
    %18 = tpu.dynamic_rotate %16 by %c96_i32 dim 1 : vector<8x128xf32>, i32 -> vector<8x128xf32>
    %c64_i32 = arith.constant 64 : i32
    %19 = tpu.dynamic_rotate %17 by %c64_i32 dim 1 : vector<8x128xf32>, i32 -> vector<8x128xf32>
    %c32_i32 = arith.constant 32 : i32
    %20 = tpu.dynamic_rotate %16 by %c32_i32 dim 1 : vector<8x128xf32>, i32 -> vector<8x128xf32>
    %21 = arith.mulf %18, %8 : vector<8x128xf32>
    %22 = arith.mulf %16, %19 : vector<8x128xf32>
    %23 = arith.addf %21, %22 : vector<8x128xf32>
    %24 = math.tanh %23 : vector<8x128xf32>
    %25 = arith.mulf %20, %24 : vector<8x128xf32>
    %cst_11 = arith.constant dense<0.000000e+00> : vector<8x128xf32>
    %26 = tpu.matmul %25, %6, %cst_11 {dimension_numbers = #tpu.dot_dimension_numbers<[1], [0], [0], [1], [0, 0, 1, 1], [], []>} : vector<8x128xf32>, vector<128x128xf32>, vector<8x128xf32> -> vector<8x128xf32>
    %27 = vector.extract_strided_slice %5 {offsets = [8, 0], sizes = [8, 128], strides = [1, 1]} : vector<64x128xf32> to vector<8x128xf32>
    %28 = arith.addf %26, %27 : vector<8x128xf32>
    %29 = arith.negf %28 : vector<8x128xf32>
    %30 = math.exp %29 : vector<8x128xf32>
    %cst_12 = arith.constant 1.000000e+00 : f32
    %31 = vector.broadcast %cst_12 : f32 to vector<8x128xf32>
    %32 = arith.addf %31, %30 : vector<8x128xf32>
    %33 = arith.divf %31, %32 : vector<8x128xf32>
    %34 = math.tanh %28 : vector<8x128xf32>
    %c96_i32_13 = arith.constant 96 : i32
    %35 = tpu.dynamic_rotate %33 by %c96_i32_13 dim 1 : vector<8x128xf32>, i32 -> vector<8x128xf32>
    %c64_i32_14 = arith.constant 64 : i32
    %36 = tpu.dynamic_rotate %34 by %c64_i32_14 dim 1 : vector<8x128xf32>, i32 -> vector<8x128xf32>
    %c32_i32_15 = arith.constant 32 : i32
    %37 = tpu.dynamic_rotate %33 by %c32_i32_15 dim 1 : vector<8x128xf32>, i32 -> vector<8x128xf32>
    %38 = arith.mulf %35, %23 : vector<8x128xf32>
    %39 = arith.mulf %33, %36 : vector<8x128xf32>
    %40 = arith.addf %38, %39 : vector<8x128xf32>
    %41 = math.tanh %40 : vector<8x128xf32>
    %42 = arith.mulf %37, %41 : vector<8x128xf32>
    %cst_16 = arith.constant dense<0.000000e+00> : vector<8x128xf32>
    %43 = tpu.matmul %42, %6, %cst_16 {dimension_numbers = #tpu.dot_dimension_numbers<[1], [0], [0], [1], [0, 0, 1, 1], [], []>} : vector<8x128xf32>, vector<128x128xf32>, vector<8x128xf32> -> vector<8x128xf32>
    %44 = vector.extract_strided_slice %5 {offsets = [16, 0], sizes = [8, 128], strides = [1, 1]} : vector<64x128xf32> to vector<8x128xf32>
    %45 = arith.addf %43, %44 : vector<8x128xf32>
    %46 = arith.negf %45 : vector<8x128xf32>
    %47 = math.exp %46 : vector<8x128xf32>
    %cst_17 = arith.constant 1.000000e+00 : f32
    %48 = vector.broadcast %cst_17 : f32 to vector<8x128xf32>
    %49 = arith.addf %48, %47 : vector<8x128xf32>
    %50 = arith.divf %48, %49 : vector<8x128xf32>
    %51 = math.tanh %45 : vector<8x128xf32>
    %c96_i32_18 = arith.constant 96 : i32
    %52 = tpu.dynamic_rotate %50 by %c96_i32_18 dim 1 : vector<8x128xf32>, i32 -> vector<8x128xf32>
    %c64_i32_19 = arith.constant 64 : i32
    %53 = tpu.dynamic_rotate %51 by %c64_i32_19 dim 1 : vector<8x128xf32>, i32 -> vector<8x128xf32>
    %c32_i32_20 = arith.constant 32 : i32
    %54 = tpu.dynamic_rotate %50 by %c32_i32_20 dim 1 : vector<8x128xf32>, i32 -> vector<8x128xf32>
    %55 = arith.mulf %52, %40 : vector<8x128xf32>
    %56 = arith.mulf %50, %53 : vector<8x128xf32>
    %57 = arith.addf %55, %56 : vector<8x128xf32>
    %58 = math.tanh %57 : vector<8x128xf32>
    %59 = arith.mulf %54, %58 : vector<8x128xf32>
    %cst_21 = arith.constant dense<0.000000e+00> : vector<8x128xf32>
    %60 = tpu.matmul %59, %6, %cst_21 {dimension_numbers = #tpu.dot_dimension_numbers<[1], [0], [0], [1], [0, 0, 1, 1], [], []>} : vector<8x128xf32>, vector<128x128xf32>, vector<8x128xf32> -> vector<8x128xf32>
    %61 = vector.extract_strided_slice %5 {offsets = [24, 0], sizes = [8, 128], strides = [1, 1]} : vector<64x128xf32> to vector<8x128xf32>
    %62 = arith.addf %60, %61 : vector<8x128xf32>
    %63 = arith.negf %62 : vector<8x128xf32>
    %64 = math.exp %63 : vector<8x128xf32>
    %cst_22 = arith.constant 1.000000e+00 : f32
    %65 = vector.broadcast %cst_22 : f32 to vector<8x128xf32>
    %66 = arith.addf %65, %64 : vector<8x128xf32>
    %67 = arith.divf %65, %66 : vector<8x128xf32>
    %68 = math.tanh %62 : vector<8x128xf32>
    %c96_i32_23 = arith.constant 96 : i32
    %69 = tpu.dynamic_rotate %67 by %c96_i32_23 dim 1 : vector<8x128xf32>, i32 -> vector<8x128xf32>
    %c64_i32_24 = arith.constant 64 : i32
    %70 = tpu.dynamic_rotate %68 by %c64_i32_24 dim 1 : vector<8x128xf32>, i32 -> vector<8x128xf32>
    %c32_i32_25 = arith.constant 32 : i32
    %71 = tpu.dynamic_rotate %67 by %c32_i32_25 dim 1 : vector<8x128xf32>, i32 -> vector<8x128xf32>
    %72 = arith.mulf %69, %57 : vector<8x128xf32>
    %73 = arith.mulf %67, %70 : vector<8x128xf32>
    %74 = arith.addf %72, %73 : vector<8x128xf32>
    %75 = math.tanh %74 : vector<8x128xf32>
    %76 = arith.mulf %71, %75 : vector<8x128xf32>
    %cst_26 = arith.constant dense<0.000000e+00> : vector<8x128xf32>
    %77 = tpu.matmul %76, %6, %cst_26 {dimension_numbers = #tpu.dot_dimension_numbers<[1], [0], [0], [1], [0, 0, 1, 1], [], []>} : vector<8x128xf32>, vector<128x128xf32>, vector<8x128xf32> -> vector<8x128xf32>
    %78 = vector.extract_strided_slice %5 {offsets = [32, 0], sizes = [8, 128], strides = [1, 1]} : vector<64x128xf32> to vector<8x128xf32>
    %79 = arith.addf %77, %78 : vector<8x128xf32>
    %80 = arith.negf %79 : vector<8x128xf32>
    %81 = math.exp %80 : vector<8x128xf32>
    %cst_27 = arith.constant 1.000000e+00 : f32
    %82 = vector.broadcast %cst_27 : f32 to vector<8x128xf32>
    %83 = arith.addf %82, %81 : vector<8x128xf32>
    %84 = arith.divf %82, %83 : vector<8x128xf32>
    %85 = math.tanh %79 : vector<8x128xf32>
    %c96_i32_28 = arith.constant 96 : i32
    %86 = tpu.dynamic_rotate %84 by %c96_i32_28 dim 1 : vector<8x128xf32>, i32 -> vector<8x128xf32>
    %c64_i32_29 = arith.constant 64 : i32
    %87 = tpu.dynamic_rotate %85 by %c64_i32_29 dim 1 : vector<8x128xf32>, i32 -> vector<8x128xf32>
    %c32_i32_30 = arith.constant 32 : i32
    %88 = tpu.dynamic_rotate %84 by %c32_i32_30 dim 1 : vector<8x128xf32>, i32 -> vector<8x128xf32>
    %89 = arith.mulf %86, %74 : vector<8x128xf32>
    %90 = arith.mulf %84, %87 : vector<8x128xf32>
    %91 = arith.addf %89, %90 : vector<8x128xf32>
    %92 = math.tanh %91 : vector<8x128xf32>
    %93 = arith.mulf %88, %92 : vector<8x128xf32>
    %cst_31 = arith.constant dense<0.000000e+00> : vector<8x128xf32>
    %94 = tpu.matmul %93, %6, %cst_31 {dimension_numbers = #tpu.dot_dimension_numbers<[1], [0], [0], [1], [0, 0, 1, 1], [], []>} : vector<8x128xf32>, vector<128x128xf32>, vector<8x128xf32> -> vector<8x128xf32>
    %95 = vector.extract_strided_slice %5 {offsets = [40, 0], sizes = [8, 128], strides = [1, 1]} : vector<64x128xf32> to vector<8x128xf32>
    %96 = arith.addf %94, %95 : vector<8x128xf32>
    %97 = arith.negf %96 : vector<8x128xf32>
    %98 = math.exp %97 : vector<8x128xf32>
    %cst_32 = arith.constant 1.000000e+00 : f32
    %99 = vector.broadcast %cst_32 : f32 to vector<8x128xf32>
    %100 = arith.addf %99, %98 : vector<8x128xf32>
    %101 = arith.divf %99, %100 : vector<8x128xf32>
    %102 = math.tanh %96 : vector<8x128xf32>
    %c96_i32_33 = arith.constant 96 : i32
    %103 = tpu.dynamic_rotate %101 by %c96_i32_33 dim 1 : vector<8x128xf32>, i32 -> vector<8x128xf32>
    %c64_i32_34 = arith.constant 64 : i32
    %104 = tpu.dynamic_rotate %102 by %c64_i32_34 dim 1 : vector<8x128xf32>, i32 -> vector<8x128xf32>
    %c32_i32_35 = arith.constant 32 : i32
    %105 = tpu.dynamic_rotate %101 by %c32_i32_35 dim 1 : vector<8x128xf32>, i32 -> vector<8x128xf32>
    %106 = arith.mulf %103, %91 : vector<8x128xf32>
    %107 = arith.mulf %101, %104 : vector<8x128xf32>
    %108 = arith.addf %106, %107 : vector<8x128xf32>
    %109 = math.tanh %108 : vector<8x128xf32>
    %110 = arith.mulf %105, %109 : vector<8x128xf32>
    %cst_36 = arith.constant dense<0.000000e+00> : vector<8x128xf32>
    %111 = tpu.matmul %110, %6, %cst_36 {dimension_numbers = #tpu.dot_dimension_numbers<[1], [0], [0], [1], [0, 0, 1, 1], [], []>} : vector<8x128xf32>, vector<128x128xf32>, vector<8x128xf32> -> vector<8x128xf32>
    %112 = vector.extract_strided_slice %5 {offsets = [48, 0], sizes = [8, 128], strides = [1, 1]} : vector<64x128xf32> to vector<8x128xf32>
    %113 = arith.addf %111, %112 : vector<8x128xf32>
    %114 = arith.negf %113 : vector<8x128xf32>
    %115 = math.exp %114 : vector<8x128xf32>
    %cst_37 = arith.constant 1.000000e+00 : f32
    %116 = vector.broadcast %cst_37 : f32 to vector<8x128xf32>
    %117 = arith.addf %116, %115 : vector<8x128xf32>
    %118 = arith.divf %116, %117 : vector<8x128xf32>
    %119 = math.tanh %113 : vector<8x128xf32>
    %c96_i32_38 = arith.constant 96 : i32
    %120 = tpu.dynamic_rotate %118 by %c96_i32_38 dim 1 : vector<8x128xf32>, i32 -> vector<8x128xf32>
    %c64_i32_39 = arith.constant 64 : i32
    %121 = tpu.dynamic_rotate %119 by %c64_i32_39 dim 1 : vector<8x128xf32>, i32 -> vector<8x128xf32>
    %c32_i32_40 = arith.constant 32 : i32
    %122 = tpu.dynamic_rotate %118 by %c32_i32_40 dim 1 : vector<8x128xf32>, i32 -> vector<8x128xf32>
    %123 = arith.mulf %120, %108 : vector<8x128xf32>
    %124 = arith.mulf %118, %121 : vector<8x128xf32>
    %125 = arith.addf %123, %124 : vector<8x128xf32>
    %126 = math.tanh %125 : vector<8x128xf32>
    %127 = arith.mulf %122, %126 : vector<8x128xf32>
    %cst_41 = arith.constant dense<0.000000e+00> : vector<8x128xf32>
    %128 = tpu.matmul %127, %6, %cst_41 {dimension_numbers = #tpu.dot_dimension_numbers<[1], [0], [0], [1], [0, 0, 1, 1], [], []>} : vector<8x128xf32>, vector<128x128xf32>, vector<8x128xf32> -> vector<8x128xf32>
    %129 = vector.extract_strided_slice %5 {offsets = [56, 0], sizes = [8, 128], strides = [1, 1]} : vector<64x128xf32> to vector<8x128xf32>
    %130 = arith.addf %128, %129 : vector<8x128xf32>
    %131 = arith.negf %130 : vector<8x128xf32>
    %132 = math.exp %131 : vector<8x128xf32>
    %cst_42 = arith.constant 1.000000e+00 : f32
    %133 = vector.broadcast %cst_42 : f32 to vector<8x128xf32>
    %134 = arith.addf %133, %132 : vector<8x128xf32>
    %135 = arith.divf %133, %134 : vector<8x128xf32>
    %136 = math.tanh %130 : vector<8x128xf32>
    %c96_i32_43 = arith.constant 96 : i32
    %137 = tpu.dynamic_rotate %135 by %c96_i32_43 dim 1 : vector<8x128xf32>, i32 -> vector<8x128xf32>
    %c64_i32_44 = arith.constant 64 : i32
    %138 = tpu.dynamic_rotate %136 by %c64_i32_44 dim 1 : vector<8x128xf32>, i32 -> vector<8x128xf32>
    %c32_i32_45 = arith.constant 32 : i32
    %139 = tpu.dynamic_rotate %135 by %c32_i32_45 dim 1 : vector<8x128xf32>, i32 -> vector<8x128xf32>
    %140 = arith.mulf %137, %125 : vector<8x128xf32>
    %141 = arith.mulf %135, %138 : vector<8x128xf32>
    %142 = arith.addf %140, %141 : vector<8x128xf32>
    %143 = math.tanh %142 : vector<8x128xf32>
    %144 = arith.mulf %139, %143 : vector<8x128xf32>
    %c0_46 = arith.constant 0 : index
    %c0_47 = arith.constant 0 : index
    %145 = vector.load %arg4[%c0_46, %c0_47] : memref<128x128xf32, #tpu.memory_space<vmem>>, vector<128x128xf32>
    %cst_48 = arith.constant dense<0.000000e+00> : vector<8x128xf32>
    %146 = tpu.matmul %144, %145, %cst_48 {dimension_numbers = #tpu.dot_dimension_numbers<[1], [0], [0], [1], [0, 0, 1, 1], [], []>} : vector<8x128xf32>, vector<128x128xf32>, vector<8x128xf32> -> vector<8x128xf32>
    %c0_49 = arith.constant 0 : index
    %c0_50 = arith.constant 0 : index
    %147 = vector.load %arg5[%c0_49, %c0_50] : memref<1x128xf32, #tpu.memory_space<vmem>>, vector<1x128xf32>
    %148 = vector.broadcast %147 : vector<1x128xf32> to vector<8x128xf32>
    %149 = arith.addf %146, %148 : vector<8x128xf32>
    %c0_51 = arith.constant 0 : index
    %c0_52 = arith.constant 0 : index
    %150 = vector.load %arg6[%c0_51, %c0_52] : memref<8x128xf32, #tpu.memory_space<vmem>>, vector<8x128xf32>
    tpu.vector_store %arg6[%c0_51, %c0_52], %149 {strides = array<i32>} : memref<8x128xf32, #tpu.memory_space<vmem>>, vector<8x128xf32>,
    return
  }
}

</mosaic_0001>

<bundles_post_ra>
// kernel: tpu_custom_call.1
= control target key start
LH: loop header
LB: loop body
LE: loop exit
PB: predicated region body
PF: predicated region fallthrough
CT: control target
= control target key end

     0   :  { %11 = vsyncpa [#allocation3], 0  ;;  %s2279_s0 = inlined_call_operand.vmem [shape: f32[64,32], index: 0, kind: input, shape index: {}]   ;;  %s2280_s1 = inlined_call_operand.vmem [shape: f32[32,128], index: 1, kind: input, shape index: {}]   ;;  %s2281_s2 = inlined_call_operand.hbm [shape: f32[128,128], index: 2, kind: input, shape index: {}]   ;;  %s2282_s3 = inlined_call_operand.vmem [shape: f32[1,128], index: 3, kind: input, shape index: {}]   ;;  %s2283_s4 = inlined_call_operand.hbm [shape: f32[128,128], index: 4, kind: input, shape index: {}]   ;;  %s2284_s5 = inlined_call_operand.vmem [shape: f32[1,128], index: 5, kind: input, shape index: {}]   ;;  %s2285_s6 = inlined_call_operand.hbm [shape: f32[8,128], index: 6, kind: output, shape index: {}]  }
   0x1   :  { %12 = vsyncpa [#allocation6], 0 }
   0x2   :  { %13 = vsyncpa [#allocation4], 0  ;;  %s1920_s21 = smov [#allocation2]   ;;  %s1848_s25 = scalar_lea.hbm %s2281_s2, 2048 }
   0x3   :  { %s23_s22 = sshll.u32 %s1920_s21, 4  ;;  %p1849_p0 = scmp.ne.s32.totalorder %s2281_s2, %s1848_s25  ;;  %s24_s22 = int_to_ptr.vmem [resolvable:$true] %s23_s22 }
   0x4   :  { %p1852_p1 = scmp.lt.u32.totalorder %s1848_s25, %s2281_s2 }
   0x6   :  { %p1854_p2 = pnand %p1852_p1, %p1849_p0 }
   0x8   :  { %1857 = shalt.err (!%p1854_p2)
}
   0x9   :  { %s1858_s30 = scalar_lea.vmem %s24_s22, 2048  ;;  %p1863_p4 = scmp.lt.s32.totalorder %s24_s22, %s24_s22 }
   0xa   :  { %p1859_p3 = scmp.ne.s32.totalorder %s24_s22, %s1858_s30  ;;  %p1864_p5 = scmp.lt.s32.totalorder %s1858_s30, %s1858_s30 }
   0xc   :  { %p1865_p6 = por %p1864_p5, %p1863_p4 }
   0xe   :  { %p1866_p7 = pnand %p1865_p6, %p1859_p3 }
  0x10   :  { %1869 = shalt.err (!%p1866_p7)
}
  0x11   :  { %s1921_s7 = smov 128   ;;  %s1922_s8 = smov 8  }
  0x12   :  { %29 = dma.hbm_to_vmem [thread:$0]  %s2281_s2, 2048, %s24_s22, [#allocation3], %s1921_s7, %s1921_s7, %s1922_s8  }
  0x13   :  { %s1923_s11 = smov [#allocation5]   ;;  %s1870_s15 = scalar_lea.hbm %s2283_s4, 2048 }
  0x14   :  { %s37_s12 = sshll.u32 %s1923_s11, 4  ;;  %p1871_p8 = scmp.ne.s32.totalorder %s2283_s4, %s1870_s15  ;;  %s38_s12 = int_to_ptr.vmem [resolvable:$true] %s37_s12 }
  0x15   :  { %p1874_p9 = scmp.lt.u32.totalorder %s1870_s15, %s2283_s4 }
  0x17   :  { %p1876_p10 = pnand %p1874_p9, %p1871_p8 }
  0x19   :  { %1879 = shalt.err (!%p1876_p10)
}
  0x1a   :  { %s1880_s20 = scalar_lea.vmem %s38_s12, 2048  ;;  %p1885_p12 = scmp.lt.s32.totalorder %s38_s12, %s38_s12 }
  0x1b   :  { %p1881_p11 = scmp.ne.s32.totalorder %s38_s12, %s1880_s20  ;;  %p1886_p13 = scmp.lt.s32.totalorder %s1880_s20, %s1880_s20 }
  0x1d   :  { %p1887_p0 = por %p1886_p13, %p1885_p12 }
  0x1f   :  { %p1888_p1 = pnand %p1887_p0, %p1881_p11 }
  0x21   :  { %1891 = shalt.err (!%p1888_p1)
}
  0x22   :  { %43 = dma.hbm_to_vmem [thread:$0]  %s2283_s4, 2048, %s38_s12, [#allocation6], %s1921_s7, %s1921_s7, %s1922_s8  }
  0x23   :  { %1914 = dma.done.wait [#allocation3], 2048  }
  0x24   :  { %1915 = vsyncadd [#allocation3], 4294965248 }
  0x25   :  { %1916 = dma.done.wait [#allocation6], 2048  }
  0x26   :  { %1917 = vsyncadd [#allocation6], 4294965248  ;;  %v1924_v0 = vmov 0.0|0.0   ;;  %vm1925_vm0 = vmmov 0   ;;  %v1926_v1 = vmov 0.0   ;;  %v201_v2 = vld [vmem:[#allocation2] sm:$0xff] }
  0x27   :  { %1557 = vmatprep.subr.bf16.mxu1 %v1924_v0  ;;  %1266 = vmatprep.mubr.msk.f32.mxu1 %vm1925_vm0, %v1926_v1  ;;  %v202_v3 = vld [vmem:[#allocation2 + $0x8] sm:$0xff]  ;;  %v203_v4 = vld [vmem:[#allocation2 + $0x10] sm:$0xff]  ;;  %v204_v6 = vld [vmem:[#allocation2 + $0x18] sm:$0xff]  ;;  %vm71_vm1 = vcmask 261120   ;;  %s1927_s19 = smov 32   ;;  %s1928_s20 = smov 96  }
  0x28   :  { %v1993_v5 = vpack.c.bf16 %v202_v3, %v201_v2  ;;  %v1996_v7 = vpack.c.bf16 %v204_v6, %v203_v4  ;;  %v60_v8 = vld [vmem:[%s2280_s1] sm:$0xff]  ;;  %v61_v9 = vld [vmem:[%s2280_s1 + $0x8] sm:$0xff]  ;;  %v62_v13 = vld [vmem:[%s2280_s1 + $0x10] sm:$0xff]  ;;  %s1929_s4 = smov 64   ;;  %s1930_s23 = smov [#allocation7]  }
  0x29   :  { %v205_v10 = vld [vmem:[#allocation2 + $0x20] sm:$0xff]  ;;  %v206_v11 = vld [vmem:[#allocation2 + $0x28] sm:$0xff]  ;;  %v1549_v12 = vpack.c.bf16 %v61_v9, %v60_v8  ;;  %v63_v14 = vld [vmem:[%s2280_s1 + $0x18] sm:$0xff]  ;;  %s1021_s24 = sshll.u32 %s1930_s23, 4  ;;  %s1022_s24 = int_to_ptr.vmem [resolvable:$true] %s1021_s24 }
  0x2a   :  { %1559 = vmatpush3.bf16.msra.mxu1 %v1993_v5  ;;  %v1553_v15 = vpack.c.bf16 %v63_v14, %v62_v13  ;;  %v52_v16 = vld [vmem:[%s2279_s0] sm:$0xff]  ;;  %v2015_v17 = vpack.c.bf16 %v206_v11, %v205_v10  ;;  %v207_v18 = vld [vmem:[#allocation2 + $0x30] sm:$0xff]  ;;  %v208_v19 = vld [vmem:[#allocation2 + $0x38] sm:$0xff]  ;;  %s1892_s25 = scalar_lea.vmem %s1022_s24, 128  ;;  %p1897_p3 = scmp.lt.s32.totalorder %s1022_s24, %s1022_s24 }
  0x2b   :  { %1560 = vmatprep.subr.bf16.mxu1 %v1924_v0  ;;  %1550 = vmatprep.subr.bf16.mxu0 %v1549_v12  ;;  %v2020_v20 = vpack.c.bf16 %v208_v19, %v207_v18  ;;  %v53_v21 = vld [vmem:[%s2279_s0 + $0x8] sm:$0xff]  ;;  %v209_v22 = vld [vmem:[#allocation2 + $0x40] sm:$0xff]  ;;  %v211_v25 = vld [vmem:[#allocation2 + $0x50] sm:$0xff]  ;;  %p1893_p2 = scmp.ne.s32.totalorder %s1022_s24, %s1892_s25  ;;  %p1898_p4 = scmp.lt.s32.totalorder %s1892_s25, %s1892_s25 }
  0x2c   :  { %1552 = vmatpush3.bf16.msra.mxu0 %v1549_v12  ;;  %1222 = vmatprep.mubr.msk.f32.mxu0 %vm71_vm1, %v52_v16  ;;  %v210_v23 = vld [vmem:[#allocation2 + $0x48] sm:$0xff]  ;;  %v212_v26 = vld [vmem:[#allocation2 + $0x58] sm:$0xff]  ;;  %v213_v28 = vld [vmem:[#allocation2 + $0x60] sm:$0xff] }
  0x2d   :  { %1554 = vmatprep.subr.bf16.mxu0 %v1553_v15  ;;  %v2029_v24 = vpack.c.bf16 %v210_v23, %v209_v22  ;;  %v2035_v27 = vpack.c.bf16 %v212_v26, %v211_v25  ;;  %v214_v29 = vld [vmem:[#allocation2 + $0x68] sm:$0xff]  ;;  %v215_v31 = vld [vmem:[#allocation2 + $0x70] sm:$0xff]  ;;  %v216_v32 = vld [vmem:[#allocation2 + $0x78] sm:$0xff]  ;;  %p1899_p5 = por %p1898_p4, %p1897_p3 }
  0x2e   :  { %1562 = vmatpush3.bf16.msra.mxu1 %v1996_v7  ;;  %v2041_v30 = vpack.c.bf16 %v214_v29, %v213_v28  ;;  %v2047_v33 = vpack.c.bf16 %v216_v32, %v215_v31  ;;  %v2086_v36 = vld [vmem:[%s2282_s3] ss:$0 sm:$0xff]  ;;  %v54_v44 = vld [vmem:[%s2279_s0 + $0x10] sm:$0xff]  ;;  %v55_v45 = vld [vmem:[%s2279_s0 + $0x18] sm:$0xff] }
  0x2f   :  { %1563 = vmatprep.subr.bf16.mxu1 %v1924_v0  ;;  %v56_v46 = vld [vmem:[%s2279_s0 + $0x20] sm:$0xff]  ;;  %v57_v47 = vld [vmem:[%s2279_s0 + $0x28] sm:$0xff]  ;;  %v58_v48 = vld [vmem:[%s2279_s0 + $0x30] sm:$0xff]  ;;  %p1900_p6 = pnand %p1899_p5, %p1893_p2 }
  0x30   :  { %1556 = vmatpush3.bf16.msra.mxu0 %v1553_v15  ;;  %v59_v50 = vld [vmem:[%s2279_s0 + $0x38] sm:$0xff] }
  0x31   :  { %1581 = vmatprep.subr.bf16.mxu0 %v1924_v0 }
  0x32   :  { %1565 = vmatpush3.bf16.msra.mxu1 %v2015_v17 }
  0x33   :  { %1566 = vmatprep.subr.bf16.mxu1 %v1924_v0  ;;  %1223 = vmatmul.mubr.msk.f32.vlgmr.msra.gmra.mrb[0].mxu0 %vm71_vm1, %v53_v21 }
  0x34   :  { %1583 = vmatpush3.bf16.msra.mxu0 %v1993_v5  ;;  %1225 = vmatprep.mubr.msk.f32.mxu0 %vm71_vm1, %v54_v44 }
  0x35   :  { %1584 = vmatprep.subr.bf16.mxu0 %v1924_v0 }
  0x36   :  { %1568 = vmatpush3.bf16.msra.mxu1 %v2020_v20 }
  0x37   :  { %1569 = vmatprep.subr.bf16.mxu1 %v1924_v0  ;;  %1226 = vmatmul.mubr.msk.f32.gmra.mrb[2].mxu0 %vm71_vm1, %v55_v45 }
  0x38   :  { %1586 = vmatpush3.bf16.msra.mxu0 %v1996_v7  ;;  %1228 = vmatprep.mubr.msk.f32.mxu0 %vm71_vm1, %v56_v46 }
  0x39   :  { %1587 = vmatprep.subr.bf16.mxu0 %v1924_v0 }
  0x3a   :  { %1571 = vmatpush3.bf16.msra.mxu1 %v2029_v24 }
  0x3b   :  { %1572 = vmatprep.subr.bf16.mxu1 %v1924_v0  ;;  %1229 = vmatmul.mubr.msk.f32.gmra.mrb[4].mxu0 %vm71_vm1, %v57_v47 }
  0x3c   :  { %1589 = vmatpush3.bf16.msra.mxu0 %v2015_v17  ;;  %1231 = vmatprep.mubr.msk.f32.mxu0 %vm71_vm1, %v58_v48 }
  0x3d   :  { %1590 = vmatprep.subr.bf16.mxu0 %v1924_v0 }
  0x3e   :  { %1574 = vmatpush3.bf16.msra.mxu1 %v2035_v27 }
  0x3f   :  { %1575 = vmatprep.subr.bf16.mxu1 %v1924_v0  ;;  %1232 = vmatmul.mubr.msk.f32.gmra.mrb[6].mxu0 %vm71_vm1, %v59_v50 }
  0x40   :  { %1592 = vmatpush3.bf16.msra.mxu0 %v2020_v20  ;;  %1301 = vmatprep.mubr.msk.f32.mxu0 %vm1925_vm0, %v1926_v1 }
  0x41   :  { %1593 = vmatprep.subr.bf16.mxu0 %v1924_v0 }
  0x42   :  { %1577 = vmatpush3.bf16.msra.mxu1 %v2041_v30 }
  0x43   :  { %1578 = vmatprep.subr.bf16.mxu1 %v1924_v0 }
  0x44   :  { %1595 = vmatpush3.bf16.msra.mxu0 %v2029_v24 }
  0x45   :  { %1596 = vmatprep.subr.bf16.mxu0 %v1924_v0 }
  0x46   :  { %1580 = vmatpush3.bf16.msra.mxu1 %v2047_v33 }
  0x47   :  { %1605 = vmatprep.subr.bf16.mxu1 %v1924_v0 }
  0x48   :  { %1598 = vmatpush3.bf16.msra.mxu0 %v2035_v27 }
  0x49   :  { %1267 = vmatmul.mubr.f32.vlgmr.msra.gmra.mrb[0].mxu1 %v1926_v1  ;;  %1599 = vmatprep.subr.bf16.mxu0 %v1924_v0 }
  0x4a   :  { %1607 = vmatpush3.bf16.msra.mxu1 %v1993_v5  ;;  %1336 = vmatprep.mubr.msk.f32.mxu1 %vm1925_vm0, %v1926_v1 }
  0x4b   :  { %1608 = vmatprep.subr.bf16.mxu1 %v1924_v0 }
  0x4c   :  { %1601 = vmatpush3.bf16.msra.mxu0 %v2041_v30 }
  0x4d   :  { %1602 = vmatprep.subr.bf16.mxu0 %v1924_v0 }
  0x4e   :  { %1610 = vmatpush3.bf16.msra.mxu1 %v1996_v7 }
  0x4f   :  { %1611 = vmatprep.subr.bf16.mxu1 %v1924_v0 }
  0x50   :  { %1604 = vmatpush3.bf16.msra.mxu0 %v2047_v33 }
  0x51   :  { %1629 = vmatprep.subr.bf16.mxu0 %v1924_v0 }
  0x52   :  { %1613 = vmatpush3.bf16.msra.mxu1 %v2015_v17 }
  0x53   :  { %1614 = vmatprep.subr.bf16.mxu1 %v1924_v0 }
  0x56   :  { %1616 = vmatpush3.bf16.msra.mxu1 %v2020_v20 }
  0x57   :  { %1617 = vmatprep.subr.bf16.mxu1 %v1924_v0 }
  0x5a   :  { %1619 = vmatpush3.bf16.msra.mxu1 %v2029_v24 }
  0x5b   :  { %1620 = vmatprep.subr.bf16.mxu1 %v1924_v0 }
  0x5e   :  { %1622 = vmatpush3.bf16.msra.mxu1 %v2035_v27 }
  0x5f   :  { %1623 = vmatprep.subr.bf16.mxu1 %v1924_v0 }
  0x62   :  { %1625 = vmatpush3.bf16.msra.mxu1 %v2041_v30 }
  0x63   :  { %1626 = vmatprep.subr.bf16.mxu1 %v1924_v0 }
  0x66   :  { %1628 = vmatpush3.bf16.msra.mxu1 %v2047_v33 }
  0x67   :  { %1653 = vmatprep.subr.bf16.mxu1 %v1924_v0 }
 0x106   :  { %v2081_v34 = vpop.f32.mrb[0].mxu0 }
 0x107   :  { %v162_v35 = vpop.f32.mrb[1].mxu0  ;;  %v168_v4 = vadd.f32 %v2081_v34, %v2086_v36 }
 0x108   :  { %v163_v37 = vadd.f32 %v2086_v36, %v162_v35 }
 0x10a   :  { %v2136_v60 = vpop.f32.mrb[2].mxu0 }
 0x10b   :  { %v172_v61 = vpop.f32.mrb[3].mxu0  ;;  %v178_v47 = vadd.f32 %v2136_v60, %v2086_v36 }
 0x10c   :  { %v173_v26 = vadd.f32 %v2086_v36, %v172_v61 }
 0x10e   :  { %v2138_v62 = vpop.f32.mrb[4].mxu0 }
 0x10f   :  { %v2140_v63 = vpop.f32.mrb[5].mxu0 }
 0x112   :  { %v2142_v2 = vpop.f32.mrb[6].mxu0 }
 0x113   :  { %v2144_v3 = vpop.f32.mrb[7].mxu0 }
 0x11c   :  { %v283_v38 = vpop.f32.mrb[0].mxu1 }
 0x11d   :  { %v284_v39 = vadd.f32 %v283_v38, %v163_v37  ;;  %v1268_v40 = vpop.f32.mrb[1].mxu1 }
 0x11f   :  { %v1040_v41 = vmul.f32 -1.442695, %v284_v39 }
 0x121   :  { %1784 = vpow2.f32 %v1040_v41 }
 0x12b   :  { %v1785_v42 = vpop.eup %1784 }
 0x12c   :  { %v290_v43 = vadd.f32 1.0, %v1785_v42 }
 0x12e   :  { %1786 = vrcp.f32 %v290_v43 }
 0x12f   :  { %1788 = vtanh.f32 %v284_v39 }
 0x138   :  { %v1787_v49 = vpop.eup %1786 }
 0x139   :  { %298 = vrot.lane.b32.xlu1 %v1787_v49, %s1927_s19  ;;  %294 = vrot.lane.b32.xlu0 %v1787_v49, %s1928_s20  ;;  %v1789_v51 = vpop.eup %1788 }
 0x13d   :  { %296 = vrot.lane.b32.xlu0 %v1789_v51, %s1929_s4 }
 0x1ab   :  { %v295_v52 = vpop.permute.xlu0 %294  ;;  %v299_v58 = vpop.permute.xlu1 %298 }
 0x1ac   :  { %v300_v54 = vmul.f32 0.0, %v295_v52 }
 0x1af   :  { %v297_v53 = vpop.permute.xlu0 %296 }
 0x1b0   :  { %v301_v55 = vmul.f32 %v1787_v49, %v297_v53 }
 0x1b2   :  { %v302_v56 = vadd.f32 %v301_v55, %v300_v54 }
 0x1b4   :  { %1790 = vtanh.f32 %v302_v56 }
 0x1be   :  { %v1791_v57 = vpop.eup %1790 }
 0x1bf   :  { %v304_v59 = vmul.f32 %v1791_v57, %v299_v58 }
 0x1c1   :  { %1302 = vmatmul.mubr.f32.vlgmr.msra.gmra.mrb[8].mxu0 %v304_v59 }
 0x1c2   :  { %1631 = vmatpush3.bf16.msra.mxu0 %v1993_v5  ;;  %1371 = vmatprep.mubr.msk.f32.mxu0 %vm1925_vm0, %v1926_v1 }
 0x1c3   :  { %1632 = vmatprep.subr.bf16.mxu0 %v1924_v0 }
 0x1c6   :  { %1634 = vmatpush3.bf16.msra.mxu0 %v1996_v7 }
 0x1c7   :  { %1635 = vmatprep.subr.bf16.mxu0 %v1924_v0 }
 0x1ca   :  { %1637 = vmatpush3.bf16.msra.mxu0 %v2015_v17 }
 0x1cb   :  { %1638 = vmatprep.subr.bf16.mxu0 %v1924_v0 }
 0x1ce   :  { %1640 = vmatpush3.bf16.msra.mxu0 %v2020_v20 }
 0x1cf   :  { %1641 = vmatprep.subr.bf16.mxu0 %v1924_v0 }
 0x1d2   :  { %1643 = vmatpush3.bf16.msra.mxu0 %v2029_v24 }
 0x1d3   :  { %1644 = vmatprep.subr.bf16.mxu0 %v1924_v0 }
 0x1d6   :  { %1646 = vmatpush3.bf16.msra.mxu0 %v2035_v27 }
 0x1d7   :  { %1647 = vmatprep.subr.bf16.mxu0 %v1924_v0 }
 0x1da   :  { %1649 = vmatpush3.bf16.msra.mxu0 %v2041_v30 }
 0x1db   :  { %1650 = vmatprep.subr.bf16.mxu0 %v1924_v0 }
 0x1de   :  { %1652 = vmatpush3.bf16.msra.mxu0 %v2047_v33 }
 0x1df   :  { %1677 = vmatprep.subr.bf16.mxu0 %v1924_v0 }
 0x294   :  { %v371_v6 = vpop.f32.mrb[8].mxu0 }
 0x295   :  { %v372_v8 = vadd.f32 %v371_v6, %v168_v4  ;;  %v1303_v9 = vpop.f32.mrb[9].mxu0 }
 0x297   :  { %v1041_v10 = vmul.f32 -1.442695, %v372_v8  ;;  %1792 = vtanh.f32 %v372_v8  ;;  %v183_v8 = vadd.f32 %v2086_v36, %v2140_v63 }
 0x299   :  { %1794 = vpow2.f32 %v1041_v10 }
 0x2a1   :  { %v1793_v11 = vpop.eup %1792 }
 0x2a2   :  { %384 = vrot.lane.b32.xlu0 %v1793_v11, %s1929_s4 }
 0x2a3   :  { %v1795_v12 = vpop.eup %1794 }
 0x2a4   :  { %v378_v13 = vadd.f32 1.0, %v1795_v12 }
 0x2a6   :  { %1796 = vrcp.f32 %v378_v13 }
 0x2b0   :  { %v1797_v14 = vpop.eup %1796 }
 0x2b1   :  { %382 = vrot.lane.b32.xlu1 %v1797_v14, %s1928_s20 }
 0x2b5   :  { %386 = vrot.lane.b32.xlu1 %v1797_v14, %s1927_s19 }
 0x314   :  { %v385_v15 = vpop.permute.xlu0 %384 }
 0x315   :  { %v389_v18 = vmul.f32 %v1797_v14, %v385_v15 }
 0x323   :  { %v383_v16 = vpop.permute.xlu1 %382 }
 0x324   :  { %v388_v19 = vmul.f32 %v383_v16, %v302_v56 }
 0x326   :  { %v390_v21 = vadd.f32 %v389_v18, %v388_v19 }
 0x327   :  { %v387_v23 = vpop.permute.xlu1 %386 }
 0x328   :  { %1798 = vtanh.f32 %v390_v21 }
 0x332   :  { %v1799_v22 = vpop.eup %1798 }
 0x333   :  { %v392_v25 = vmul.f32 %v1799_v22, %v387_v23 }
 0x335   :  { %1337 = vmatmul.mubr.f32.vlgmr.msra.gmra.mrb[2].mxu1 %v392_v25 }
 0x336   :  { %1655 = vmatpush3.bf16.msra.mxu1 %v1993_v5  ;;  %1406 = vmatprep.mubr.msk.f32.mxu1 %vm1925_vm0, %v1926_v1 }
 0x337   :  { %1656 = vmatprep.subr.bf16.mxu1 %v1924_v0 }
 0x33a   :  { %1658 = vmatpush3.bf16.msra.mxu1 %v1996_v7 }
 0x33b   :  { %1659 = vmatprep.subr.bf16.mxu1 %v1924_v0 }
 0x33e   :  { %1661 = vmatpush3.bf16.msra.mxu1 %v2015_v17 }
 0x33f   :  { %1662 = vmatprep.subr.bf16.mxu1 %v1924_v0 }
 0x342   :  { %1664 = vmatpush3.bf16.msra.mxu1 %v2020_v20 }
 0x343   :  { %1665 = vmatprep.subr.bf16.mxu1 %v1924_v0 }
 0x346   :  { %1667 = vmatpush3.bf16.msra.mxu1 %v2029_v24 }
 0x347   :  { %1668 = vmatprep.subr.bf16.mxu1 %v1924_v0 }
 0x34a   :  { %1670 = vmatpush3.bf16.msra.mxu1 %v2035_v27 }
 0x34b   :  { %1671 = vmatprep.subr.bf16.mxu1 %v1924_v0 }
 0x34e   :  { %1673 = vmatpush3.bf16.msra.mxu1 %v2041_v30 }
 0x34f   :  { %1674 = vmatprep.subr.bf16.mxu1 %v1924_v0 }
 0x352   :  { %1676 = vmatpush3.bf16.msra.mxu1 %v2047_v33 }
 0x353   :  { %1701 = vmatprep.subr.bf16.mxu1 %v1924_v0 }
 0x408   :  { %v459_v28 = vpop.f32.mrb[2].mxu1 }
 0x409   :  { %v460_v29 = vadd.f32 %v459_v28, %v173_v26  ;;  %v1338_v31 = vpop.f32.mrb[3].mxu1 }
 0x40b   :  { %v1042_v32 = vmul.f32 -1.442695, %v460_v29  ;;  %1800 = vtanh.f32 %v460_v29 }
 0x40d   :  { %1802 = vpow2.f32 %v1042_v32 }
 0x415   :  { %v1801_v34 = vpop.eup %1800 }
 0x416   :  { %472 = vrot.lane.b32.xlu1 %v1801_v34, %s1929_s4 }
 0x417   :  { %v1803_v35 = vpop.eup %1802 }
 0x418   :  { %v466_v37 = vadd.f32 1.0, %v1803_v35 }
 0x41a   :  { %1804 = vrcp.f32 %v466_v37 }
 0x424   :  { %v1805_v38 = vpop.eup %1804 }
 0x425   :  { %470 = vrot.lane.b32.xlu0 %v1805_v38, %s1928_s20 }
 0x429   :  { %474 = vrot.lane.b32.xlu0 %v1805_v38, %s1927_s19 }
 0x488   :  { %v473_v39 = vpop.permute.xlu1 %472 }
 0x489   :  { %v477_v41 = vmul.f32 %v1805_v38, %v473_v39  ;;  %v193_v39 = vadd.f32 %v2086_v36, %v2144_v3 }
 0x497   :  { %v471_v40 = vpop.permute.xlu0 %470 }
 0x498   :  { %v476_v42 = vmul.f32 %v471_v40, %v390_v21 }
 0x49a   :  { %v478_v43 = vadd.f32 %v477_v41, %v476_v42 }
 0x49b   :  { %v475_v45 = vpop.permute.xlu0 %474 }
 0x49c   :  { %1806 = vtanh.f32 %v478_v43 }
 0x4a6   :  { %v1807_v44 = vpop.eup %1806 }
 0x4a7   :  { %v480_v46 = vmul.f32 %v1807_v44, %v475_v45 }
 0x4a9   :  { %1372 = vmatmul.mubr.f32.vlgmr.msra.gmra.mrb[10].mxu0 %v480_v46 }
 0x4aa   :  { %1679 = vmatpush3.bf16.msra.mxu0 %v1993_v5  ;;  %1441 = vmatprep.mubr.msk.f32.mxu0 %vm1925_vm0, %v1926_v1 }
 0x4ab   :  { %1680 = vmatprep.subr.bf16.mxu0 %v1924_v0 }
 0x4ae   :  { %1682 = vmatpush3.bf16.msra.mxu0 %v1996_v7 }
 0x4af   :  { %1683 = vmatprep.subr.bf16.mxu0 %v1924_v0 }
 0x4b2   :  { %1685 = vmatpush3.bf16.msra.mxu0 %v2015_v17 }
 0x4b3   :  { %1686 = vmatprep.subr.bf16.mxu0 %v1924_v0 }
 0x4b6   :  { %1688 = vmatpush3.bf16.msra.mxu0 %v2020_v20 }
 0x4b7   :  { %1689 = vmatprep.subr.bf16.mxu0 %v1924_v0 }
 0x4ba   :  { %1691 = vmatpush3.bf16.msra.mxu0 %v2029_v24 }
 0x4bb   :  { %1692 = vmatprep.subr.bf16.mxu0 %v1924_v0 }
 0x4be   :  { %1694 = vmatpush3.bf16.msra.mxu0 %v2035_v27 }
 0x4bf   :  { %1695 = vmatprep.subr.bf16.mxu0 %v1924_v0 }
 0x4c2   :  { %1697 = vmatpush3.bf16.msra.mxu0 %v2041_v30 }
 0x4c3   :  { %1698 = vmatprep.subr.bf16.mxu0 %v1924_v0 }
 0x4c6   :  { %1700 = vmatpush3.bf16.msra.mxu0 %v2047_v33 }
 0x4c7   :  { %1725 = vmatprep.subr.bf16.mxu0 %v1924_v0 }
 0x57c   :  { %v547_v48 = vpop.f32.mrb[10].mxu0 }
 0x57d   :  { %v548_v49 = vadd.f32 %v547_v48, %v178_v47  ;;  %v1373_v50 = vpop.f32.mrb[11].mxu0 }
 0x57f   :  { %v1043_v51 = vmul.f32 -1.442695, %v548_v49  ;;  %1808 = vtanh.f32 %v548_v49 }
 0x581   :  { %1810 = vpow2.f32 %v1043_v51 }
 0x589   :  { %v1809_v52 = vpop.eup %1808 }
 0x58a   :  { %560 = vrot.lane.b32.xlu0 %v1809_v52, %s1929_s4 }
 0x58b   :  { %v1811_v53 = vpop.eup %1810 }
 0x58c   :  { %v554_v54 = vadd.f32 1.0, %v1811_v53 }
 0x58e   :  { %1812 = vrcp.f32 %v554_v54  ;;  %v198_v54 = vadd.f32 %v2142_v2, %v2086_v36  ;;  %v928_v2 = vld [vmem:[#allocation5 + $0x38] sm:$0xff] }
 0x598   :  { %v1813_v55 = vpop.eup %1812 }
 0x599   :  { %558 = vrot.lane.b32.xlu1 %v1813_v55, %s1928_s20 }
 0x59d   :  { %562 = vrot.lane.b32.xlu1 %v1813_v55, %s1927_s19 }
 0x5fc   :  { %v561_v56 = vpop.permute.xlu0 %560 }
 0x5fd   :  { %v565_v58 = vmul.f32 %v1813_v55, %v561_v56  ;;  %v921_v55 = vld [vmem:[#allocation5] sm:$0xff]  ;;  %v922_v56 = vld [vmem:[#allocation5 + $0x8] sm:$0xff] }
 0x60b   :  { %v559_v57 = vpop.permute.xlu1 %558 }
 0x60c   :  { %v564_v59 = vmul.f32 %v559_v57, %v478_v43 }
 0x60e   :  { %v566_v60 = vadd.f32 %v565_v58, %v564_v59  ;;  %v1750_v58 = vpack.c.bf16 %v922_v56, %v921_v55 }
 0x60f   :  { %v563_v4 = vpop.permute.xlu1 %562 }
 0x610   :  { %1814 = vtanh.f32 %v566_v60 }
 0x61a   :  { %v1815_v61 = vpop.eup %1814 }
 0x61b   :  { %v568_v6 = vmul.f32 %v1815_v61, %v563_v4  ;;  %v923_v61 = vld [vmem:[#allocation5 + $0x10] sm:$0xff]  ;;  %v924_v4 = vld [vmem:[#allocation5 + $0x18] sm:$0xff] }
 0x61d   :  { %1407 = vmatmul.mubr.f32.vlgmr.msra.gmra.mrb[4].mxu1 %v568_v6  ;;  %v1753_v6 = vpack.c.bf16 %v924_v4, %v923_v61 }
 0x61e   :  { %1703 = vmatpush3.bf16.msra.mxu1 %v1993_v5  ;;  %1476 = vmatprep.mubr.msk.f32.mxu1 %vm1925_vm0, %v1926_v1 }
 0x61f   :  { %1704 = vmatprep.subr.bf16.mxu1 %v1924_v0 }
 0x622   :  { %1706 = vmatpush3.bf16.msra.mxu1 %v1996_v7 }
 0x623   :  { %1707 = vmatprep.subr.bf16.mxu1 %v1924_v0 }
 0x626   :  { %1709 = vmatpush3.bf16.msra.mxu1 %v2015_v17 }
 0x627   :  { %1710 = vmatprep.subr.bf16.mxu1 %v1924_v0 }
 0x62a   :  { %1712 = vmatpush3.bf16.msra.mxu1 %v2020_v20 }
 0x62b   :  { %1713 = vmatprep.subr.bf16.mxu1 %v1924_v0 }
 0x62e   :  { %1715 = vmatpush3.bf16.msra.mxu1 %v2029_v24 }
 0x62f   :  { %1716 = vmatprep.subr.bf16.mxu1 %v1924_v0 }
 0x632   :  { %1718 = vmatpush3.bf16.msra.mxu1 %v2035_v27 }
 0x633   :  { %1719 = vmatprep.subr.bf16.mxu1 %v1924_v0 }
 0x636   :  { %1721 = vmatpush3.bf16.msra.mxu1 %v2041_v30 }
 0x637   :  { %1722 = vmatprep.subr.bf16.mxu1 %v1924_v0 }
 0x63a   :  { %1724 = vmatpush3.bf16.msra.mxu1 %v2047_v33 }
 0x63b   :  { %1749 = vmatprep.subr.bf16.mxu1 %v1924_v0 }
 0x6f0   :  { %v635_v9 = vpop.f32.mrb[4].mxu1 }
 0x6f1   :  { %v636_v10 = vadd.f32 %v635_v9, %v183_v8  ;;  %v1408_v11 = vpop.f32.mrb[5].mxu1  ;;  %v925_v9 = vld [vmem:[#allocation5 + $0x20] sm:$0xff] }
 0x6f3   :  { %v1044_v12 = vmul.f32 -1.442695, %v636_v10  ;;  %1816 = vtanh.f32 %v636_v10  ;;  %v926_v10 = vld [vmem:[#allocation5 + $0x28] sm:$0xff] }
 0x6f4   :  { %v1756_v11 = vpack.c.bf16 %v926_v10, %v925_v9 }
 0x6f5   :  { %1818 = vpow2.f32 %v1044_v12 }
 0x6fd   :  { %v1817_v13 = vpop.eup %1816 }
 0x6fe   :  { %648 = vrot.lane.b32.xlu1 %v1817_v13, %s1929_s4 }
 0x6ff   :  { %v1819_v14 = vpop.eup %1818 }
 0x700   :  { %v642_v15 = vadd.f32 1.0, %v1819_v14 }
 0x702   :  { %1820 = vrcp.f32 %v642_v15  ;;  %v929_v15 = vld [vmem:[#allocation5 + $0x40] sm:$0xff] }
 0x70c   :  { %v1821_v16 = vpop.eup %1820 }
 0x70d   :  { %646 = vrot.lane.b32.xlu0 %v1821_v16, %s1928_s20 }
 0x711   :  { %650 = vrot.lane.b32.xlu0 %v1821_v16, %s1927_s19 }
 0x770   :  { %v649_v18 = vpop.permute.xlu1 %648 }
 0x771   :  { %v653_v63 = vmul.f32 %v1821_v16, %v649_v18  ;;  %v930_v16 = vld [vmem:[#allocation5 + $0x48] sm:$0xff] }
 0x77f   :  { %v647_v19 = vpop.permute.xlu0 %646 }
 0x780   :  { %v652_v21 = vmul.f32 %v647_v19, %v566_v60  ;;  %v1762_v19 = vpack.c.bf16 %v930_v16, %v929_v15 }
 0x782   :  { %v654_v22 = vadd.f32 %v653_v63, %v652_v21  ;;  %v931_v63 = vld [vmem:[#allocation5 + $0x50] sm:$0xff]  ;;  %v932_v21 = vld [vmem:[#allocation5 + $0x58] sm:$0xff] }
 0x783   :  { %v651_v25 = vpop.permute.xlu0 %650 }
 0x784   :  { %1822 = vtanh.f32 %v654_v22 }
 0x78e   :  { %v1823_v23 = vpop.eup %1822 }
 0x78f   :  { %v656_v26 = vmul.f32 %v1823_v23, %v651_v25  ;;  %v933_v23 = vld [vmem:[#allocation5 + $0x60] sm:$0xff]  ;;  %v934_v25 = vld [vmem:[#allocation5 + $0x68] sm:$0xff] }
 0x791   :  { %1442 = vmatmul.mubr.f32.vlgmr.msra.gmra.mrb[12].mxu0 %v656_v26  ;;  %v1768_v26 = vpack.c.bf16 %v934_v25, %v933_v23 }
 0x792   :  { %1727 = vmatpush3.bf16.msra.mxu0 %v1993_v5  ;;  %1511 = vmatprep.mubr.msk.f32.mxu0 %vm1925_vm0, %v1926_v1  ;;  %v188_v5 = vadd.f32 %v2138_v62, %v2086_v36  ;;  %v927_v36 = vld [vmem:[#allocation5 + $0x30] sm:$0xff] }
 0x793   :  { %1728 = vmatprep.subr.bf16.mxu0 %v1924_v0  ;;  %v1759_v12 = vpack.c.bf16 %v928_v2, %v927_v36 }
 0x796   :  { %1730 = vmatpush3.bf16.msra.mxu0 %v1996_v7 }
 0x797   :  { %1731 = vmatprep.subr.bf16.mxu0 %v1924_v0 }
 0x79a   :  { %1733 = vmatpush3.bf16.msra.mxu0 %v2015_v17 }
 0x79b   :  { %1734 = vmatprep.subr.bf16.mxu0 %v1924_v0 }
 0x79e   :  { %1736 = vmatpush3.bf16.msra.mxu0 %v2020_v20 }
 0x79f   :  { %1737 = vmatprep.subr.bf16.mxu0 %v1924_v0 }
 0x7a2   :  { %1739 = vmatpush3.bf16.msra.mxu0 %v2029_v24 }
 0x7a3   :  { %1740 = vmatprep.subr.bf16.mxu0 %v1924_v0 }
 0x7a6   :  { %1742 = vmatpush3.bf16.msra.mxu0 %v2035_v27 }
 0x7a7   :  { %1743 = vmatprep.subr.bf16.mxu0 %v1924_v0 }
 0x7aa   :  { %1745 = vmatpush3.bf16.msra.mxu0 %v2041_v30 }
 0x7ab   :  { %1746 = vmatprep.subr.bf16.mxu0 %v1924_v0 }
 0x7ae   :  { %1748 = vmatpush3.bf16.msra.mxu0 %v2047_v33 }
 0x864   :  { %v723_v7 = vpop.f32.mrb[12].mxu0 }
 0x865   :  { %v724_v17 = vadd.f32 %v723_v7, %v188_v5  ;;  %v1443_v20 = vpop.f32.mrb[13].mxu0  ;;  %v935_v5 = vld [vmem:[#allocation5 + $0x70] sm:$0xff]  ;;  %v936_v7 = vld [vmem:[#allocation5 + $0x78] sm:$0xff] }
 0x866   :  { %v1771_v20 = vpack.c.bf16 %v936_v7, %v935_v5 }
 0x867   :  { %v1045_v28 = vmul.f32 -1.442695, %v724_v17  ;;  %1824 = vtanh.f32 %v724_v17 }
 0x869   :  { %1826 = vpow2.f32 %v1045_v28 }
 0x871   :  { %v1825_v24 = vpop.eup %1824 }
 0x872   :  { %736 = vrot.lane.b32.xlu0 %v1825_v24, %s1929_s4 }
 0x873   :  { %v1827_v27 = vpop.eup %1826 }
 0x874   :  { %v730_v29 = vadd.f32 1.0, %v1827_v27 }
 0x876   :  { %1828 = vrcp.f32 %v730_v29 }
 0x880   :  { %v1829_v30 = vpop.eup %1828 }
 0x881   :  { %734 = vrot.lane.b32.xlu1 %v1829_v30, %s1928_s20 }
 0x885   :  { %738 = vrot.lane.b32.xlu1 %v1829_v30, %s1927_s19 }
 0x8e4   :  { %v737_v33 = vpop.permute.xlu0 %736 }
 0x8e5   :  { %v741_v62 = vmul.f32 %v1829_v30, %v737_v33 }
 0x8f3   :  { %v735_v31 = vpop.permute.xlu1 %734 }
 0x8f4   :  { %v740_v32 = vmul.f32 %v735_v31, %v654_v22  ;;  %v1765_v22 = vpack.c.bf16 %v932_v21, %v931_v63 }
 0x8f6   :  { %v742_v34 = vadd.f32 %v741_v62, %v740_v32 }
 0x8f7   :  { %v739_v37 = vpop.permute.xlu1 %738 }
 0x8f8   :  { %1830 = vtanh.f32 %v742_v34 }
 0x902   :  { %v1831_v35 = vpop.eup %1830 }
 0x903   :  { %v744_v38 = vmul.f32 %v1831_v35, %v739_v37 }
 0x905   :  { %1477 = vmatmul.mubr.f32.vlgmr.msra.gmra.mrb[6].mxu1 %v744_v38 }
 0x906   :  { %1546 = vmatprep.mubr.msk.f32.mxu1 %vm1925_vm0, %v1926_v1  ;;  %1751 = vmatpush3.bf16.msra.mxu1 %v1750_v58 }
 0x907   :  { %1752 = vmatprep.subr.bf16.mxu1 %v1924_v0 }
 0x90a   :  { %1754 = vmatpush3.bf16.msra.mxu1 %v1753_v6 }
 0x90b   :  { %1755 = vmatprep.subr.bf16.mxu1 %v1924_v0 }
 0x90e   :  { %1757 = vmatpush3.bf16.msra.mxu1 %v1756_v11 }
 0x90f   :  { %1758 = vmatprep.subr.bf16.mxu1 %v1924_v0 }
 0x912   :  { %1760 = vmatpush3.bf16.msra.mxu1 %v1759_v12 }
 0x913   :  { %1761 = vmatprep.subr.bf16.mxu1 %v1924_v0 }
 0x916   :  { %1763 = vmatpush3.bf16.msra.mxu1 %v1762_v19 }
 0x917   :  { %1764 = vmatprep.subr.bf16.mxu1 %v1924_v0 }
 0x91a   :  { %1766 = vmatpush3.bf16.msra.mxu1 %v1765_v22 }
 0x91b   :  { %1767 = vmatprep.subr.bf16.mxu1 %v1924_v0 }
 0x91e   :  { %1769 = vmatpush3.bf16.msra.mxu1 %v1768_v26 }
 0x91f   :  { %1770 = vmatprep.subr.bf16.mxu1 %v1924_v0  ;;  %v1048_v0 = vld [vmem:[%s2284_s5] ss:$0 sm:$0xff] }
 0x922   :  { %1772 = vmatpush3.bf16.msra.mxu1 %v1771_v20 }
 0x9d8   :  { %v811_v40 = vpop.f32.mrb[6].mxu1 }
 0x9d9   :  { %v812_v41 = vadd.f32 %v811_v40, %v193_v39  ;;  %v1478_v42 = vpop.f32.mrb[7].mxu1 }
 0x9db   :  { %v1046_v43 = vmul.f32 -1.442695, %v812_v41  ;;  %1832 = vtanh.f32 %v812_v41 }
 0x9dd   :  { %1834 = vpow2.f32 %v1046_v43 }
 0x9e5   :  { %v1833_v44 = vpop.eup %1832 }
 0x9e6   :  { %824 = vrot.lane.b32.xlu1 %v1833_v44, %s1929_s4 }
 0x9e7   :  { %v1835_v45 = vpop.eup %1834 }
 0x9e8   :  { %v818_v46 = vadd.f32 1.0, %v1835_v45 }
 0x9ea   :  { %1836 = vrcp.f32 %v818_v46 }
 0x9f4   :  { %v1837_v47 = vpop.eup %1836 }
 0x9f5   :  { %822 = vrot.lane.b32.xlu0 %v1837_v47, %s1928_s20 }
 0x9f9   :  { %826 = vrot.lane.b32.xlu0 %v1837_v47, %s1927_s19 }
 0xa58   :  { %v825_v1 = vpop.permute.xlu1 %824 }
 0xa59   :  { %v829_v3 = vmul.f32 %v1837_v47, %v825_v1 }
 0xa67   :  { %v823_v48 = vpop.permute.xlu0 %822 }
 0xa68   :  { %v828_v49 = vmul.f32 %v823_v48, %v742_v34 }
 0xa6a   :  { %v2248_v50 = vadd.f32 %v829_v3, %v828_v49 }
 0xa6b   :  { %v827_v52 = vpop.permute.xlu0 %826 }
 0xa6c   :  { %1838 = vtanh.f32 %v2248_v50 }
 0xa76   :  { %v1839_v51 = vpop.eup %1838 }
 0xa77   :  { %v832_v53 = vmul.f32 %v1839_v51, %v827_v52 }
 0xa79   :  { %1512 = vmatmul.mubr.f32.vlgmr.msra.gmra.mrb[14].mxu0 %v832_v53 }
 0xb4c   :  { %v899_v57 = vpop.f32.mrb[14].mxu0 }
 0xb4d   :  { %v900_v59 = vadd.f32 %v899_v57, %v198_v54  ;;  %v1513_v60 = vpop.f32.mrb[15].mxu0 }
 0xb4f   :  { %v1047_v8 = vmul.f32 -1.442695, %v900_v59  ;;  %1840 = vtanh.f32 %v900_v59 }
 0xb51   :  { %1842 = vpow2.f32 %v1047_v8 }
 0xb59   :  { %v1841_v13 = vpop.eup %1840 }
 0xb5a   :  { %912 = vrot.lane.b32.xlu0 %v1841_v13, %s1929_s4 }
 0xb5b   :  { %v1843_v14 = vpop.eup %1842 }
 0xb5c   :  { %v906_v18 = vadd.f32 1.0, %v1843_v14 }
 0xb5e   :  { %1844 = vrcp.f32 %v906_v18 }
 0xb68   :  { %v1845_v17 = vpop.eup %1844 }
 0xb69   :  { %910 = vrot.lane.b32.xlu1 %v1845_v17, %s1928_s20 }
 0xb6d   :  { %914 = vrot.lane.b32.xlu1 %v1845_v17, %s1927_s19 }
 0xbcc   :  { %v913_v28 = vpop.permute.xlu0 %912 }
 0xbcd   :  { %v917_v27 = vmul.f32 %v1845_v17, %v913_v28 }
 0xbdb   :  { %v911_v24 = vpop.permute.xlu1 %910 }
 0xbdc   :  { %v916_v29 = vmul.f32 %v911_v24, %v2248_v50 }
 0xbde   :  { %v918_v30 = vadd.f32 %v917_v27, %v916_v29 }
 0xbdf   :  { %v915_v31 = vpop.permute.xlu1 %914 }
 0xbe0   :  { %1846 = vtanh.f32 %v918_v30 }
 0xbea   :  { %v1847_v33 = vpop.eup %1846 }
 0xbeb   :  { %v920_v62 = vmul.f32 %v1847_v33, %v915_v31 }
 0xbed   :  { %1547 = vmatmul.mubr.f32.vlgmr.msra.gmra.mrb[8].mxu1 %v920_v62 }
 0xcc0   :  { %v1010_v32 = vpop.f32.mrb[8].mxu1 }
 0xcc1   :  { %v1011_v34 = vadd.f32 %v1048_v0, %v1010_v32  ;;  %v1548_v35 = vpop.f32.mrb[9].mxu1 }
 0xcc3   :  { %1014 = vst [vmem:[#allocation7] sm:$0xff] %v1011_v34 }
 0xcc4   :  { %1903 = shalt.err (!%p1900_p6)
}
 0xcc5   :  { %s1904_s28 = scalar_lea.hbm %s2285_s6, 128 }
 0xcc6   :  { %p1905_p7 = scmp.ne.s32.totalorder %s2285_s6, %s1904_s28  ;;  %p1908_p8 = scmp.lt.u32.totalorder %s1904_s28, %s2285_s6 }
 0xcc8   :  { %p1910_p9 = pnand %p1908_p8, %p1905_p7 }
 0xcca   :  { %1913 = shalt.err (!%p1910_p9)
}
 0xccb   :  { %1024 = dma.vmem_to_hbm [thread:$0]  %s1022_s24, 128, %s2285_s6, [#allocation4]  }
 0xccc   :  { %1918 = dma.done.wait [#allocation4], 128  }
 0xccd   :  { %1919 = vsyncadd [#allocation4], 4294967168 }
 0xcce   :  { %1028 = vsyncpa [#allocation3], 1 }
 0xccf   :  { %1029 = vsyncpa [#allocation6], 1 }
 0xcd0   :  { %1030 = vsyncpa [#allocation4], 1 }

</bundles_post_ra>
